<compile_context>
chip_gen: v6e
topology: v6e:2x2x1
jax: 0.10.0
libtpu: 0.0.40
codegen_flags: <defaults>
</compile_context>

<pallas_src>
import functools

import jax
import jax.numpy as jnp
from jax.experimental import pallas as pl
from jax.experimental.pallas import tpu as pltpu

MASK_FILL = -1e30  # large finite negative instead of -inf (NaN-safe masking)


# ---------------------------------------------------------------------------
# Generation-aware knobs (VMEM budget, bf16 EUP availability)
# ---------------------------------------------------------------------------
def _vmem_capacity_bytes():
    try:
        return int(pltpu.get_tpu_info().vmem_capacity_bytes)
    except Exception:
        return 64 * 1024 * 1024  # conservative (v7x per-TC physical VMEM)


_VMEM_CAP = _vmem_capacity_bytes()
_VMEM_LIMIT = min((_VMEM_CAP * 3) // 4, 96 * 1024 * 1024)  # scoped limit we request
_TILE_BUDGET = max(_VMEM_LIMIT - 8 * 1024 * 1024, 16 * 1024 * 1024)


def _use_bf16_tanh():
    """bf16 EUP exists on v6e/v7x only; v5e (and older) must tanh in f32."""
    try:
        kind = jax.devices()[0].device_kind.lower()
    except Exception:
        return False
    return ("v6" in kind) or ("v7" in kind) or ("7x" in kind)


# ---------------------------------------------------------------------------
# Kernel 1: encoder projection (hoisted out of the decoder-step loop)
# ---------------------------------------------------------------------------
def _enc_projection_kernel(enc_ref, wenc_t_ref, out_ref):
    # bf16 x bf16 -> f32 MXU accumulate; store bf16 (halves writeback and the
    # per-decoder-step re-read of temp_enc).
    out_ref[...] = jnp.dot(enc_ref[...], wenc_t_ref[...],
                           preferred_element_type=jnp.float32).astype(out_ref.dtype)


def encoder_projection(enc_bf16, wenc_t_bf16):
    """temp_enc = enc @ Wenc^T, once per sequence (NOT per decoder step)."""
    S, H = enc_bf16.shape
    block_s = S
    for cand in (512, 256, 128):
        if S % cand == 0:
            block_s = cand
            break
    nt = S // block_s
    cost = pl.CostEstimate(flops=2 * S * H * H,
                           transcendentals=0,
                           bytes_accessed=2 * S * H + 2 * H * H + 2 * S * H)
    return pl.pallas_call(
        _enc_projection_kernel,
        out_shape=jax.ShapeDtypeStruct((S, H), jnp.bfloat16),
        grid_spec=pltpu.PrefetchScalarGridSpec(
            num_scalar_prefetch=0,
            grid=(nt,),
            in_specs=[pl.BlockSpec((block_s, H), lambda i: (i, 0)),
                      pl.BlockSpec((H, H), lambda i: (0, 0))],
            out_specs=pl.BlockSpec((block_s, H), lambda i: (i, 0)),
        ),
        compiler_params=pltpu.CompilerParams(
            dimension_semantics=("parallel",),   # independent S tiles
            vmem_limit_bytes=_VMEM_LIMIT),
        cost_estimate=cost,
    )(enc_bf16, wenc_t_bf16)


# ---------------------------------------------------------------------------
# Kernel 2a: per-decoder-step attention — single-tile fast path
# ---------------------------------------------------------------------------
def _attention_single_tile_kernel(tdec_ref, va_ref, temp_enc_ref, enc_ref,
                                  mask_ref, ctx_ref, attn_ref, *, use_bf16_tanh):
    # Additive-attention energies; everything after the small transpose is a
    # lane-dense (1, S) row (unmasked vst stores, cheap lane reduces).
    pre = temp_enc_ref[...].astype(jnp.float32) + tdec_ref[...]            # (S, H)
    if use_bf16_tanh:
        x = jnp.tanh(pre.astype(jnp.bfloat16)).astype(jnp.float32)         # bf16 EUP
    else:
        x = jnp.tanh(pre)                                                   # f32 EUP (v5e)
    e_col = jnp.sum(x * va_ref[...], axis=1, keepdims=True)                 # (S, 1)
    e_row = jnp.transpose(e_col)                                            # (1, S)
    e_row = jnp.where(mask_ref[...] > 0, e_row, MASK_FILL)

    # Plain (non-online) softmax: one exp pass, exact normalization.
    m = jnp.max(e_row, axis=1, keepdims=True)
    p = jnp.exp(e_row - m)                                                   # (1, S)
    inv_l = 1.0 / jnp.sum(p, axis=1, keepdims=True)                          # exact, once
    attn_ref[...] = (p * inv_l).astype(attn_ref.dtype)
    ctx = jnp.dot(p.astype(jnp.bfloat16), enc_ref[...],
                  preferred_element_type=jnp.float32)                        # (1, H) MXU
    ctx_ref[...] = (ctx * inv_l).astype(ctx_ref.dtype)


# ---------------------------------------------------------------------------
# Kernel 2b: per-decoder-step attention — S-tiled online-softmax path
# ---------------------------------------------------------------------------
def _attention_tiled_kernel(tdec_ref, va_ref, temp_enc_ref, enc_ref, mask_ref,
                            ctx_ref, attn_ref,
                            m_sc, l_sc, acc_sc, e_sc, *, use_bf16_tanh):
    i = pl.program_id(0)
    nt = pl.num_programs(0)
    block_s = temp_enc_ref.shape[0]

    @pl.when(i == 0)
    def _init():
        m_sc[...] = jnp.full(m_sc.shape, -jnp.inf, dtype=jnp.float32)
        l_sc[...] = jnp.zeros(l_sc.shape, dtype=jnp.float32)
        acc_sc[...] = jnp.zeros(acc_sc.shape, dtype=jnp.float32)

    pre = temp_enc_ref[...].astype(jnp.float32) + tdec_ref[...]            # (TS, H)
    if use_bf16_tanh:
        x = jnp.tanh(pre.astype(jnp.bfloat16)).astype(jnp.float32)
    else:
        x = jnp.tanh(pre)
    e_col = jnp.sum(x * va_ref[...], axis=1, keepdims=True)                 # (TS, 1)
    e_row = jnp.transpose(e_col)                                            # (1, TS)
    e_row = jnp.where(mask_ref[...] > 0, e_row, MASK_FILL)

    # Online softmax accumulation across sequence tiles.
    m_prev = m_sc[...]
    m_new = jnp.maximum(m_prev, jnp.max(e_row, axis=1, keepdims=True))
    alpha = jnp.exp(m_prev - m_new)
    p = jnp.exp(e_row - m_new)
    l_sc[...] = alpha * l_sc[...] + jnp.sum(p, axis=1, keepdims=True)
    acc_sc[...] = alpha * acc_sc[...] + jnp.dot(
        p.astype(jnp.bfloat16), enc_ref[...], preferred_element_type=jnp.float32)
    m_sc[...] = m_new

    # Stash masked energies (lane-dense) so normalized weights are emitted once.
    start = pl.multiple_of(i * block_s, block_s)
    e_sc[:, pl.ds(start, block_s)] = e_row

    @pl.when(i == nt - 1)
    def _finalize():
        inv_l = 1.0 / l_sc[...]                                              # exact, once
        ctx_ref[...] = (acc_sc[...] * inv_l).astype(ctx_ref.dtype)
        attn_ref[...] = (jnp.exp(e_sc[...] - m_sc[...]) * inv_l).astype(attn_ref.dtype)


# ---------------------------------------------------------------------------
# Wrapper
# ---------------------------------------------------------------------------
def attention_forward(encoder_output, decoder_hidden, attention_mask,
                      wenc, wdec, va, *, block_s=None, force_tiled=False):
    """
    encoder_output : (1, S, H) float32
    decoder_hidden : (1, H)    float32
    attention_mask : (1, S) / (S,) bool (True = attend)
    wenc, wdec     : (H, H) Linear weights (out, in) — torch convention
    va             : (1, H) Linear weight
    returns (context (1, 1, H), attention_weights (1, S, 1))
    """
    B, S, H = encoder_output.shape
    assert B == 1, "module semantics assume batch 1"
    enc_bf16 = encoder_output.reshape(S, H).astype(jnp.bfloat16)

    # --- Hoisted encoder projection: once per sequence, NOT per decoder step.
    # TODO(synk): for a full decode loop, keep temp_enc/enc resident in VMEM
    # across decoder steps (persistent multi-step kernel) instead of
    # re-streaming them from HBM on every step.
    temp_enc = encoder_projection(enc_bf16, wenc.T.astype(jnp.bfloat16))     # (S, H) bf16

    # --- Decoder projection: M=1 matmul, hoisted to plain XLA (perf review).
    temp_dec = (decoder_hidden.reshape(1, H).astype(jnp.float32)
                @ wdec.T.astype(jnp.float32))                                # (1, H) f32

    va_row = va.reshape(1, H).astype(jnp.float32)
    mask_row = attention_mask.reshape(1, S).astype(jnp.int32)                # lane-dense

    use_bf16_tanh = _use_bf16_tanh()

    # Per-tile VMEM footprint: double-buffered bf16 temp_enc + enc tiles, plus
    # the full-row energies / attn buffers and small scalars.
    def tile_bytes(bs):
        return 2 * 2 * (bs * H * 2) + 8 * S + 64 * 1024

    cost = pl.CostEstimate(
        flops=6 * S * H,
        transcendentals=S * H + 2 * S,
        bytes_accessed=2 * S * H + 2 * S * H + 8 * S + 12 * H)

    common = dict(
        out_shape=(jax.ShapeDtypeStruct((1, H), jnp.float32),
                   jax.ShapeDtypeStruct((1, S), jnp.float32)),
        compiler_params=pltpu.CompilerParams(
            dimension_semantics=("arbitrary",),
            vmem_limit_bytes=_VMEM_LIMIT),
        cost_estimate=cost,
    )

    divisors = [c for c in (2048, 1024, 512, 256, 128) if c < S and S % c == 0]
    single_ok = (tile_bytes(S) <= _TILE_BUDGET) or (not divisors)

    if not force_tiled and single_ok:
        # ---- Single-tile fast path: one grid step, no online-softmax machinery.
        ctx, attn = pl.pallas_call(
            functools.partial(_attention_single_tile_kernel,
                              use_bf16_tanh=use_bf16_tanh),
            grid_spec=pltpu.PrefetchScalarGridSpec(
                num_scalar_prefetch=0,
                grid=(1,),
                in_specs=[
                    pl.BlockSpec((1, H), lambda i: (0, 0)),        # temp_dec
                    pl.BlockSpec((1, H), lambda i: (0, 0)),        # va
                    pl.BlockSpec((S, H), lambda i: (0, 0)),        # temp_enc (bf16)
                    pl.BlockSpec((S, H), lambda i: (0, 0)),        # enc (bf16)
                    pl.BlockSpec((1, S), lambda i: (0, 0)),        # mask
                ],
                out_specs=(pl.BlockSpec((1, H), lambda i: (0, 0)),
                           pl.BlockSpec((1, S), lambda i: (0, 0))),
            ),
            **common,
        )(temp_dec, va_row, temp_enc, enc_bf16, mask_row)
    else:
        # ---- Tiled online-softmax path for long sequences. ----
        if block_s is None:
            fitting = [c for c in divisors if tile_bytes(c) <= _TILE_BUDGET]
            block_s = fitting[0] if fitting else (divisors[-1] if divisors else S)
        block_s = min(block_s, S)
        assert S % block_s == 0, "S must be a multiple of block_s"
        nt = S // block_s
        # TODO(synk): on v7x, split this serial S loop across the two TensorCores
        # (leading parallel axis of size 2 + partial-softmax merge epilogue).
        ctx, attn = pl.pallas_call(
            functools.partial(_attention_tiled_kernel,
                              use_bf16_tanh=use_bf16_tanh),
            grid_spec=pltpu.PrefetchScalarGridSpec(
                num_scalar_prefetch=0,
                grid=(nt,),
                in_specs=[
                    pl.BlockSpec((1, H), lambda i: (0, 0)),          # temp_dec
                    pl.BlockSpec((1, H), lambda i: (0, 0)),          # va
                    pl.BlockSpec((block_s, H), lambda i: (i, 0)),    # temp_enc tile (bf16)
                    pl.BlockSpec((block_s, H), lambda i: (i, 0)),    # enc tile (bf16)
                    pl.BlockSpec((1, block_s), lambda i: (0, i)),    # mask tile (lane-dense)
                ],
                out_specs=(pl.BlockSpec((1, H), lambda i: (0, 0)),   # context (resident)
                           pl.BlockSpec((1, S), lambda i: (0, 0))),  # attn (resident)
                scratch_shapes=[
                    pltpu.VMEM((1, 1), jnp.float32),   # running max
                    pltpu.VMEM((1, 1), jnp.float32),   # running denominator
                    pltpu.VMEM((1, H), jnp.float32),   # context accumulator
                    pltpu.VMEM((1, S), jnp.float32),   # masked energies (full row)
                ],
            ),
            **common,
        )(temp_dec, va_row, temp_enc, enc_bf16, mask_row)

    context = ctx.reshape(1, 1, H)
    attention_weights = attn.reshape(1, S, 1)
    return context, attention_weights


if __name__ == "__main__":
    # Small, TPU-friendly demo shapes: H multiple of 128 (full vreg lanes),
    # S = 256 so the forced-tiled run exercises the online-softmax path (nt=2).
    S, H = 256, 128
    key = jax.random.PRNGKey(0)
    k_enc, k_dec, k_we, k_wd, k_va = jax.random.split(key, 5)

    encoder_output = jax.random.normal(k_enc, (1, S, H), dtype=jnp.float32)
    decoder_hidden = jax.random.normal(k_dec, (1, H), dtype=jnp.float32)
    # Padding-style mask: last 32 positions masked out.
    attention_mask = (jnp.arange(S) < S - 32).reshape(1, S)

    scale = 1.0 / jnp.sqrt(H)
    wenc = jax.random.uniform(k_we, (H, H), minval=-scale, maxval=scale, dtype=jnp.float32)
    wdec = jax.random.uniform(k_wd, (H, H), minval=-scale, maxval=scale, dtype=jnp.float32)
    va = jax.random.uniform(k_va, (1, H), minval=-scale, maxval=scale, dtype=jnp.float32)

    # Pure-JAX f32 reference (same math as the PyTorch module).
    temp_enc_ref = encoder_output[0] @ wenc.T
    temp_dec_ref = (decoder_hidden @ wdec.T).reshape(1, -1)
    x_ref = jnp.tanh(temp_dec_ref + temp_enc_ref)
    energies_ref = x_ref @ va.T
    energies_ref = jnp.where(attention_mask.reshape(S, 1), energies_ref, -jnp.inf)
    ref_attn = jax.nn.softmax(energies_ref, axis=0)
    ref_ctx = (ref_attn.T @ encoder_output[0]).reshape(1, 1, H)

    # Path 1: single-tile fast path (typical decode-time S).
    ctx1, attn1 = attention_forward(encoder_output, decoder_hidden, attention_mask,
                                    wenc, wdec, va)
    # Path 2: tiled online-softmax path (forced, exercises the accumulators).
    ctx2, attn2 = attention_forward(encoder_output, decoder_hidden, attention_mask,
                                    wenc, wdec, va, force_tiled=True, block_s=128)
    jax.block_until_ready((ctx1, attn1, ctx2, attn2))

    # Tolerances account for the bf16 MXU / bf16 temp_enc / bf16-tanh path.
    for name, (ctx, attn) in (("single", (ctx1, attn1)), ("tiled", (ctx2, attn2))):
        assert ctx.shape == (1, 1, H) and attn.shape == (1, S, 1), name
        assert jnp.allclose(ctx, ref_ctx, atol=2e-2), f"{name}: context mismatch"
        assert jnp.allclose(attn.reshape(S, 1), ref_attn, atol=1e-2), f"{name}: attn mismatch"
        assert jnp.allclose(jnp.sum(attn), 1.0, atol=1e-3), f"{name}: attn not normalized"

    print("KERNEL_OK")
</pallas_src>

<mosaic_0001>
module attributes {stable_mosaic.version = 11 : i64} {
  func.func @_enc_projection_kernel(%arg0: i32, %arg1: memref<256x128xbf16, #tpu.memory_space<vmem>>, %arg2: memref<128x128xbf16, #tpu.memory_space<vmem>>, %arg3: memref<256x128xbf16, #tpu.memory_space<vmem>>) attributes {dimension_semantics = [#tpu.dimension_semantics<parallel>], iteration_bounds = array<i64: 1>, scalar_prefetch = 0 : i64, scratch_operands = 0 : i64, tpu.core_type = #tpu.core_type<tc>, window_params = [{transform_indices = @transform_0, window_bounds = array<i64: 256, 128>}, {pipeline_mode = #tpu.pipeline_mode<synchronous>, transform_indices = @transform_1, window_bounds = array<i64: 128, 128>}, {transform_indices = @transform_2, window_bounds = array<i64: 256, 128>}]} {
    %c0 = arith.constant 0 : index
    %c0_0 = arith.constant 0 : index
    %0 = vector.load %arg1[%c0, %c0_0] : memref<256x128xbf16, #tpu.memory_space<vmem>>, vector<256x128xbf16>
    %c0_1 = arith.constant 0 : index
    %c0_2 = arith.constant 0 : index
    %1 = vector.load %arg2[%c0_1, %c0_2] : memref<128x128xbf16, #tpu.memory_space<vmem>>, vector<128x128xbf16>
    %cst = arith.constant dense<0.000000e+00> : vector<256x128xf32>
    %2 = tpu.matmul %0, %1, %cst {dimension_numbers = #tpu.dot_dimension_numbers<[1], [0], [0], [1], [0, 0, 1, 1], [], []>} : vector<256x128xbf16>, vector<128x128xbf16>, vector<256x128xf32> -> vector<256x128xf32>
    %3 = arith.truncf %2 : vector<256x128xf32> to vector<256x128xbf16>
    %c0_3 = arith.constant 0 : index
    %c0_4 = arith.constant 0 : index
    %4 = vector.load %arg3[%c0_3, %c0_4] : memref<256x128xbf16, #tpu.memory_space<vmem>>, vector<256x128xbf16>
    tpu.vector_store %arg3[%c0_3, %c0_4], %3 {strides = array<i32>} : memref<256x128xbf16, #tpu.memory_space<vmem>>, vector<256x128xbf16>,
    return
  }
  func.func @transform_0(%arg0: i32) -> (i32, i32) {
    %c0_i32 = arith.constant 0 : i32
    %c0_i32_0 = arith.constant 0 : i32
    return %arg0, %c0_i32 : i32, i32
  }
  func.func @transform_1(%arg0: i32) -> (i32, i32) {
    %c0_i32 = arith.constant 0 : i32
    %c0_i32_0 = arith.constant 0 : i32
    %c0_i32_1 = arith.constant 0 : i32
    return %c0_i32, %c0_i32_0 : i32, i32
  }
  func.func @transform_2(%arg0: i32) -> (i32, i32) {
    %c0_i32 = arith.constant 0 : i32
    %c0_i32_0 = arith.constant 0 : i32
    return %arg0, %c0_i32 : i32, i32
  }
}

</mosaic_0001>

<bundles_post_ra>
// kernel: tpu_custom_call.1
= control target key start
LH: loop header
LB: loop body
LE: loop exit
PB: predicated region body
PF: predicated region fallthrough
CT: control target
= control target key end

     0   :  { %7 = vsyncpa [#allocation3], 0  ;;  %s976_s0 = inlined_call_operand.hbm [shape: bf16[256,128], index: 0, kind: input, shape index: {}]   ;;  %s977_s1 = inlined_call_operand.hbm [shape: bf16[128,128], index: 1, kind: input, shape index: {}]   ;;  %s978_s2 = inlined_call_operand.hbm [shape: bf16[256,128], index: 2, kind: output, shape index: {}]  }
   0x1   :  { %8 = vsyncpa [#allocation6], 0 }
   0x2   :  { %9 = vsyncpa [#allocation4], 0  ;;  %s938_s9 = smov [#allocation2]  }
   0x3   :  { %s15_s10 = sshll.u32 %s938_s9, 4  ;;  %s16_s10 = int_to_ptr.vmem [resolvable:$true] %s15_s10 }
   0x4   :  { %s880_s11 = scalar_lea.vmem %s16_s10, 2048  ;;  %p885_p1 = scmp.lt.s32.totalorder %s16_s10, %s16_s10 }
   0x5   :  { %p881_p0 = scmp.ne.s32.totalorder %s16_s10, %s880_s11  ;;  %p886_p2 = scmp.lt.s32.totalorder %s880_s11, %s880_s11 }
   0x7   :  { %p887_p3 = por %p886_p2, %p885_p1 }
   0x9   :  { %p888_p4 = pnand %p887_p3, %p881_p0 }
   0xb   :  { %891 = shalt.err (!%p888_p4)
}
   0xc   :  { %s939_s12 = smov 64   ;;  %s940_s13 = smov 4  }
   0xd   :  { %21 = dma.hbm_to_vmem [thread:$0]  %s976_s0, 2048, %s16_s10, [#allocation3], %s939_s12, %s939_s12, %s940_s13  }
   0xe   :  { %s941_s16 = smov [#allocation5]  }
   0xf   :  { %s27_s17 = sshll.u32 %s941_s16, 4  ;;  %s28_s17 = int_to_ptr.vmem [resolvable:$true] %s27_s17 }
  0x10   :  { %s900_s18 = scalar_lea.vmem %s28_s17, 1024  ;;  %p905_p6 = scmp.lt.s32.totalorder %s28_s17, %s28_s17 }
  0x11   :  { %p901_p5 = scmp.ne.s32.totalorder %s28_s17, %s900_s18  ;;  %p906_p7 = scmp.lt.s32.totalorder %s900_s18, %s900_s18 }
  0x13   :  { %p907_p8 = por %p906_p7, %p905_p6 }
  0x15   :  { %p908_p9 = pnand %p907_p8, %p901_p5 }
  0x17   :  { %911 = shalt.err (!%p908_p9)
}
  0x18   :  { %33 = dma.hbm_to_vmem [thread:$0]  %s977_s1, 1024, %s28_s17, [#allocation6], %s939_s12, %s939_s12, %s940_s13  }
  0x19   :  { %932 = dma.done.wait [#allocation3], 2048  }
  0x1a   :  { %933 = vsyncadd [#allocation3], 4294965248 }
  0x1b   :  { %934 = dma.done.wait [#allocation6], 1024  }
  0x1c   :  { %935 = vsyncadd [#allocation6], 4294966272  ;;  %v848_v0 = vld [vmem:[#allocation5 + $0x38] sm:$0xff]   ;;  %v849_v1 = vld [vmem:[#allocation5 + $0x30] sm:$0xff]   ;;  %s942_s0 = smov [#allocation7]  }
  0x1d   :  { %779 = vmatprep.subr.bf16.mxu0 %v848_v0  ;;  %827 = vmatprep.subr.bf16.mxu1 %v848_v0  ;;  %v850_v2 = vld [vmem:[#allocation5 + $0x28] sm:$0xff]   ;;  %v851_v3 = vld [vmem:[#allocation5 + $0x20] sm:$0xff]   ;;  %v852_v6 = vld [vmem:[#allocation5 + $0x18] sm:$0xff]   ;;  %s559_s1 = sshll.u32 %s942_s0, 4  ;;  %s560_s1 = int_to_ptr.vmem [resolvable:$true] %s559_s1 }
  0x1e   :  { %780 = vmatpush3.bf16.msra.mxu0 %v848_v0  ;;  %835 = vmatpush3.bf16.msra.mxu1 %v848_v0  ;;  %v856_v4 = vld [vmem:[#allocation2] sm:$0xff]   ;;  %v853_v7 = vld [vmem:[#allocation5 + $0x10] sm:$0xff]   ;;  %v854_v8 = vld [vmem:[#allocation5 + $0x8] sm:$0xff]   ;;  %s912_s21 = scalar_lea.vmem %s560_s1, 2048  ;;  %p917_p11 = scmp.lt.s32.totalorder %s560_s1, %s560_s1 }
  0x1f   :  { %781 = vmatprep.subr.bf16.mxu0 %v849_v1  ;;  %828 = vmatprep.subr.bf16.mxu1 %v849_v1  ;;  %v857_v5 = vld [vmem:[#allocation2 + $0x40] sm:$0xff]   ;;  %v858_v10 = vld [vmem:[#allocation2 + $0x8] sm:$0xff]   ;;  %v860_v12 = vld [vmem:[#allocation2 + $0x10] sm:$0xff]   ;;  %p913_p10 = scmp.ne.s32.totalorder %s560_s1, %s912_s21  ;;  %p918_p12 = scmp.lt.s32.totalorder %s912_s21, %s912_s21 }
  0x20   :  { %795 = vmatprep.mubr.bf16.mxu0 %v856_v4  ;;  %811 = vmatprep.mubr.bf16.mxu1 %v857_v5  ;;  %v855_v9 = vld [vmem:[#allocation5] sm:$0xff]   ;;  %v859_v11 = vld [vmem:[#allocation2 + $0x48] sm:$0xff]   ;;  %v861_v13 = vld [vmem:[#allocation2 + $0x50] sm:$0xff]  }
  0x21   :  { %v862_v14 = vld [vmem:[#allocation2 + $0x18] sm:$0xff]   ;;  %v864_v16 = vld [vmem:[#allocation2 + $0x20] sm:$0xff]   ;;  %v866_v18 = vld [vmem:[#allocation2 + $0x28] sm:$0xff]   ;;  %p919_p13 = por %p918_p12, %p917_p11 }
  0x22   :  { %782 = vmatpush3.bf16.msra.mxu0 %v849_v1  ;;  %836 = vmatpush3.bf16.msra.mxu1 %v849_v1  ;;  %v863_v15 = vld [vmem:[#allocation2 + $0x58] sm:$0xff]   ;;  %v865_v17 = vld [vmem:[#allocation2 + $0x60] sm:$0xff]   ;;  %v867_v19 = vld [vmem:[#allocation2 + $0x68] sm:$0xff]  }
  0x23   :  { %783 = vmatprep.subr.bf16.mxu0 %v850_v2  ;;  %829 = vmatprep.subr.bf16.mxu1 %v850_v2  ;;  %v868_v20 = vld [vmem:[#allocation2 + $0x30] sm:$0xff]   ;;  %v870_v22 = vld [vmem:[#allocation2 + $0x38] sm:$0xff]   ;;  %p920_p0 = pnand %p919_p13, %p913_p10 }
  0x24   :  { %v869_v21 = vld [vmem:[#allocation2 + $0x70] sm:$0xff]   ;;  %v871_v23 = vld [vmem:[#allocation2 + $0x78] sm:$0xff]  }
  0x26   :  { %784 = vmatpush3.bf16.msra.mxu0 %v850_v2  ;;  %837 = vmatpush3.bf16.msra.mxu1 %v850_v2 }
  0x27   :  { %785 = vmatprep.subr.bf16.mxu0 %v851_v3  ;;  %830 = vmatprep.subr.bf16.mxu1 %v851_v3 }
  0x2a   :  { %786 = vmatpush3.bf16.msra.mxu0 %v851_v3  ;;  %838 = vmatpush3.bf16.msra.mxu1 %v851_v3 }
  0x2b   :  { %787 = vmatprep.subr.bf16.mxu0 %v852_v6  ;;  %831 = vmatprep.subr.bf16.mxu1 %v852_v6 }
  0x2e   :  { %788 = vmatpush3.bf16.msra.mxu0 %v852_v6  ;;  %839 = vmatpush3.bf16.msra.mxu1 %v852_v6 }
  0x2f   :  { %789 = vmatprep.subr.bf16.mxu0 %v853_v7  ;;  %832 = vmatprep.subr.bf16.mxu1 %v853_v7 }
  0x32   :  { %790 = vmatpush3.bf16.msra.mxu0 %v853_v7  ;;  %840 = vmatpush3.bf16.msra.mxu1 %v853_v7 }
  0x33   :  { %791 = vmatprep.subr.bf16.mxu0 %v854_v8  ;;  %833 = vmatprep.subr.bf16.mxu1 %v854_v8 }
  0x36   :  { %792 = vmatpush3.bf16.msra.mxu0 %v854_v8  ;;  %841 = vmatpush3.bf16.msra.mxu1 %v854_v8 }
  0x37   :  { %793 = vmatprep.subr.bf16.mxu0 %v855_v9  ;;  %834 = vmatprep.subr.bf16.mxu1 %v855_v9 }
  0x3a   :  { %794 = vmatpush3.bf16.msra.mxu0 %v855_v9  ;;  %842 = vmatpush3.bf16.msra.mxu1 %v855_v9 }
  0x3d   :  { %796 = vmatmul.mubr.bf16.vlgmr.msra.gmra.mxu0 %v858_v10  ;;  %812 = vmatmul.mubr.bf16.vlgmr.msra.gmra.mxu1 %v859_v11 }
  0x3e   :  { %799 = vmatprep.mubr.bf16.mxu0 %v860_v12  ;;  %815 = vmatprep.mubr.bf16.mxu1 %v861_v13 }
  0x45   :  { %800 = vmatmul.mubr.bf16.gmra.mxu0 %v862_v14  ;;  %816 = vmatmul.mubr.bf16.gmra.mxu1 %v863_v15 }
  0x46   :  { %803 = vmatprep.mubr.bf16.mxu0 %v864_v16  ;;  %819 = vmatprep.mubr.bf16.mxu1 %v865_v17 }
  0x4d   :  { %804 = vmatmul.mubr.bf16.gmra.mxu0 %v866_v18  ;;  %820 = vmatmul.mubr.bf16.gmra.mxu1 %v867_v19 }
  0x4e   :  { %807 = vmatprep.mubr.bf16.mxu0 %v868_v20  ;;  %823 = vmatprep.mubr.bf16.mxu1 %v869_v21 }
  0x55   :  { %808 = vmatmul.mubr.bf16.gmra.mxu0 %v870_v22  ;;  %824 = vmatmul.mubr.bf16.gmra.mxu1 %v871_v23 }
  0xfd   :  { %v797_v24 = vpop.f32.mrf.mxu0  ;;  %v813_v25 = vpop.f32.mrf.mxu1 }
  0xff   :  { %v267_v26 = vpop.f32.mrf.mxu0  ;;  %v331_v27 = vpop.f32.mrf.mxu1 }
 0x101   :  { %v798_v28 = vpop.f32.mrf.mxu0  ;;  %v814_v29 = vpop.f32.mrf.mxu1 }
 0x102   :  { %v668_v30 = vpack.c.bf16 %v798_v28, %v797_v24  ;;  %v708_v31 = vpack.c.bf16 %v814_v29, %v813_v25 }
 0x103   :  { %v270_v32 = vpop.f32.mrf.mxu0  ;;  %v334_v33 = vpop.f32.mrf.mxu1 }
 0x104   :  { %740 = vst [vmem:[#allocation7 + $0x8] sm:$0xff] %v668_v30   ;;  %748 = vst [vmem:[#allocation7 + $0x48] sm:$0xff] %v708_v31   ;;  %v663_v34 = vpack.c.bf16 %v270_v32, %v267_v26  ;;  %v703_v35 = vpack.c.bf16 %v334_v33, %v331_v27 }
 0x105   :  { %v801_v36 = vpop.f32.mrf.mxu0  ;;  %v817_v37 = vpop.f32.mrf.mxu1 }
 0x106   :  { %664 = vst [vmem:[#allocation7] sm:$0xff] %v663_v34   ;;  %747 = vst [vmem:[#allocation7 + $0x40] sm:$0xff] %v703_v35  }
 0x107   :  { %v283_v38 = vpop.f32.mrf.mxu0  ;;  %v347_v39 = vpop.f32.mrf.mxu1 }
 0x109   :  { %v802_v40 = vpop.f32.mrf.mxu0  ;;  %v818_v41 = vpop.f32.mrf.mxu1 }
 0x10a   :  { %v678_v42 = vpack.c.bf16 %v802_v40, %v801_v36  ;;  %v718_v43 = vpack.c.bf16 %v818_v41, %v817_v37 }
 0x10b   :  { %v286_v44 = vpop.f32.mrf.mxu0  ;;  %v350_v45 = vpop.f32.mrf.mxu1 }
 0x10c   :  { %742 = vst [vmem:[#allocation7 + $0x18] sm:$0xff] %v678_v42   ;;  %750 = vst [vmem:[#allocation7 + $0x58] sm:$0xff] %v718_v43   ;;  %v673_v46 = vpack.c.bf16 %v286_v44, %v283_v38  ;;  %v713_v47 = vpack.c.bf16 %v350_v45, %v347_v39 }
 0x10d   :  { %v805_v48 = vpop.f32.mrf.mxu0  ;;  %v821_v49 = vpop.f32.mrf.mxu1 }
 0x10e   :  { %741 = vst [vmem:[#allocation7 + $0x10] sm:$0xff] %v673_v46   ;;  %749 = vst [vmem:[#allocation7 + $0x50] sm:$0xff] %v713_v47  }
 0x10f   :  { %v299_v50 = vpop.f32.mrf.mxu0  ;;  %v363_v51 = vpop.f32.mrf.mxu1 }
 0x111   :  { %v806_v52 = vpop.f32.mrf.mxu0  ;;  %v822_v53 = vpop.f32.mrf.mxu1 }
 0x112   :  { %v688_v54 = vpack.c.bf16 %v806_v52, %v805_v48  ;;  %v728_v55 = vpack.c.bf16 %v822_v53, %v821_v49 }
 0x113   :  { %v302_v56 = vpop.f32.mrf.mxu0  ;;  %v366_v57 = vpop.f32.mrf.mxu1 }
 0x114   :  { %744 = vst [vmem:[#allocation7 + $0x28] sm:$0xff] %v688_v54   ;;  %752 = vst [vmem:[#allocation7 + $0x68] sm:$0xff] %v728_v55   ;;  %v683_v58 = vpack.c.bf16 %v302_v56, %v299_v50  ;;  %v723_v59 = vpack.c.bf16 %v366_v57, %v363_v51 }
 0x115   :  { %v809_v60 = vpop.f32.mrf.mxu0  ;;  %v825_v61 = vpop.f32.mrf.mxu1 }
 0x116   :  { %743 = vst [vmem:[#allocation7 + $0x20] sm:$0xff] %v683_v58   ;;  %751 = vst [vmem:[#allocation7 + $0x60] sm:$0xff] %v723_v59  }
 0x117   :  { %v315_v62 = vpop.f32.mrf.mxu0  ;;  %v379_v63 = vpop.f32.mrf.mxu1 }
 0x119   :  { %v810_v0 = vpop.f32.mrf.mxu0  ;;  %v826_v1 = vpop.f32.mrf.mxu1 }
 0x11a   :  { %v698_v2 = vpack.c.bf16 %v810_v0, %v809_v60  ;;  %v738_v3 = vpack.c.bf16 %v826_v1, %v825_v61 }
 0x11b   :  { %v318_v4 = vpop.f32.mrf.mxu0  ;;  %v382_v5 = vpop.f32.mrf.mxu1 }
 0x11c   :  { %746 = vst [vmem:[#allocation7 + $0x38] sm:$0xff] %v698_v2   ;;  %754 = vst [vmem:[#allocation7 + $0x78] sm:$0xff] %v738_v3   ;;  %v693_v6 = vpack.c.bf16 %v318_v4, %v315_v62  ;;  %v733_v7 = vpack.c.bf16 %v382_v5, %v379_v63 }
 0x11e   :  { %745 = vst [vmem:[#allocation7 + $0x30] sm:$0xff] %v693_v6   ;;  %753 = vst [vmem:[#allocation7 + $0x70] sm:$0xff] %v733_v7  }
 0x11f   :  { %923 = shalt.err (!%p920_p0)
}
 0x120   :  { %565 = dma.vmem_to_hbm [thread:$0]  %s560_s1, 2048, %s978_s2, [#allocation4], %s939_s12, %s939_s12, %s940_s13  }
 0x121   :  { %936 = dma.done.wait [#allocation4], 2048  }
 0x122   :  { %937 = vsyncadd [#allocation4], 4294965248 }
 0x123   :  { %569 = vsyncpa [#allocation3], 1 }
 0x124   :  { %570 = vsyncpa [#allocation6], 1 }
 0x125   :  { %571 = vsyncpa [#allocation4], 1 }

</bundles_post_ra>
